<compile_context>
chip_gen: v5e
topology: v5e:2x2
jax: 0.10.0
libtpu: 0.0.40
codegen_flags: <defaults>
</compile_context>

<pallas_src>
import functools

import jax
import jax.numpy as jnp
from jax.experimental import pallas as pl
from jax.experimental.pallas import tpu as pltpu


def _round_up(n, m):
    return ((n + m - 1) // m) * m


def _vmem_capacity_bytes():
    """Physical per-core VMEM; conservative 64 MiB (v7x) fallback."""
    try:
        return int(pltpu.get_tpu_info().vmem_capacity_bytes)
    except Exception:
        return 64 * 1024 * 1024


# ---------------------------------------------------------------------------
# Kernels
# ---------------------------------------------------------------------------
def _value_head_kernel_single(x_ref, w1t_ref, b1_ref, w2_ref, b2_ref, o_ref):
    # x_ref:   [tb, F]      f32/bf16 (cast to bf16 for the MXU fast path)
    # w1t_ref: [F, h_pad]   bf16, whole array resident in VMEM (single copy)
    # b1_ref:  [1, h_pad]   f32, whole array
    # w2_ref:  [1, h_pad]   f32, whole array (2nd Linear weight row, 0-padded)
    # b2_ref:  [1, 1]       f32, SMEM scalar
    # o_ref:   [tb, 1]      f32
    x = x_ref[...].astype(jnp.bfloat16)
    h = jnp.dot(x, w1t_ref[...], preferred_element_type=jnp.float32)
    h = jnp.maximum(h + b1_ref[...], 0.0)
    # out_features == 1: VPU multiply + lane reduction (padded lanes are 0).
    y = jnp.sum(h * w2_ref[...], axis=-1, keepdims=True) + b2_ref[0, 0]
    o_ref[...] = y.astype(o_ref.dtype)


def _value_head_kernel_ktiled(x_ref, w1t_ref, b1_ref, w2_ref, b2_ref, o_ref,
                              acc_ref):
    # Same math with the F (reduction) axis tiled on grid axis 1; w1^T is
    # streamed in (tk, h_pad) slabs and double-buffered by the pipeline.
    k = pl.program_id(1)

    @pl.when(k == 0)
    def _():
        acc_ref[...] = jnp.zeros_like(acc_ref)

    x = x_ref[...].astype(jnp.bfloat16)
    acc_ref[...] += jnp.dot(x, w1t_ref[...], preferred_element_type=jnp.float32)

    @pl.when(k == pl.num_programs(1) - 1)
    def _():
        h = jnp.maximum(acc_ref[...] + b1_ref[...], 0.0)
        y = jnp.sum(h * w2_ref[...], axis=-1, keepdims=True) + b2_ref[0, 0]
        o_ref[...] = y.astype(o_ref.dtype)


# ---------------------------------------------------------------------------
# Wrapper
# ---------------------------------------------------------------------------
@functools.partial(jax.jit, static_argnames=("force_ktile",))
def res_value_head(x, w1, b1, w2, b2, *, force_ktile=False):
    """Pallas implementation of Res_ValueHead.forward.

    x:  [B, F] float32 (bf16 also accepted at the interface)
    w1: [H, F], b1: [H]      (first nn.Linear, PyTorch layout)
    w2: [1, H], b2: [1]      (second nn.Linear)
    returns [B, 1] float32
    """
    B, F = x.shape
    H = w1.shape[0]
    x_itemsize = jnp.dtype(x.dtype).itemsize

    h_pad = _round_up(H, 128)

    # ---- batch tiling ----------------------------------------------------
    b_pad0 = _round_up(B, 8)              # only sublane alignment needed
    if b_pad0 >= 256:
        # >= 2 grid steps so v7x megacore can shard the batch axis.
        tb = min(512, _round_up((b_pad0 + 1) // 2, 128))
    else:
        tb = b_pad0                       # tiny batch: no 128x padding waste
    b_pad = _round_up(B, tb)
    nb = b_pad // tb

    # ---- generation-aware VMEM sizing -------------------------------------
    phys_vmem = _vmem_capacity_bytes()
    budget = (phys_vmem * 5) // 8         # leave headroom for compiler temps

    single_bytes = (F * h_pad * 2              # w1^T (bf16, single copy)
                    + 2 * h_pad * 4            # b1 + w2 rows
                    + 2 * tb * F * x_itemsize  # x (double-buffered)
                    + 2 * tb * 4               # out (double-buffered)
                    + 3 * tb * h_pad * 4)      # h + epilogue temps (estimate)

    use_ktile = force_ktile or (single_bytes > budget)

    if use_ktile:
        tk = 128
        for cand in (1024, 512, 256, 128):
            kt_bytes = (2 * cand * h_pad * 2          # w1^T slabs (2 bufs)
                        + 2 * h_pad * 4
                        + 2 * tb * cand * x_itemsize  # x slabs (2 bufs)
                        + 2 * tb * 4
                        + tb * h_pad * 4              # acc scratch
                        + 2 * tb * h_pad * 4)         # epilogue temps
            if kt_bytes <= budget:
                tk = cand
                break
        used_bytes = (2 * tk * h_pad * 2 + 2 * h_pad * 4
                      + 2 * tb * tk * x_itemsize + 2 * tb * 4
                      + 3 * tb * h_pad * 4)
        f_pad = _round_up(F, tk)
        nk = f_pad // tk
    else:
        f_pad = F
        nk = 1
        used_bytes = single_bytes

    vmem_limit = min((phys_vmem * 3) // 4,
                     max(used_bytes + (4 << 20), 16 << 20))

    # ---- one-time layout plumbing (wrapper side, not the hot path) --------
    x_p = jnp.pad(x, ((0, b_pad - B), (0, f_pad - F)))
    w1t = jnp.pad(w1.T.astype(jnp.bfloat16),
                  ((0, f_pad - F), (0, h_pad - H)))                    # [f_pad, h_pad]
    b1_row = jnp.pad(b1.reshape(1, H).astype(jnp.float32),
                     ((0, 0), (0, h_pad - H)))                         # [1, h_pad]
    w2_row = jnp.pad(w2.reshape(1, H).astype(jnp.float32),
                     ((0, 0), (0, h_pad - H)))                         # [1, h_pad]
    b2_smem = b2.reshape(1, 1).astype(jnp.float32)                     # [1, 1]

    cost = pl.CostEstimate(
        flops=2 * b_pad * f_pad * h_pad + 3 * b_pad * h_pad,
        transcendentals=0,
        bytes_accessed=(b_pad * f_pad * x_itemsize
                        + (nb if use_ktile else 1) * f_pad * h_pad * 2
                        + 2 * h_pad * 4 + b_pad * 4),
    )

    if not use_ktile:
        out = pl.pallas_call(
            _value_head_kernel_single,
            out_shape=jax.ShapeDtypeStruct((b_pad, 1), jnp.float32),
            grid=(nb,),
            in_specs=[
                pl.BlockSpec((tb, f_pad), lambda i: (i, 0)),          # x: batch-tiled
                pl.BlockSpec(memory_space=pltpu.MemorySpace.VMEM),    # w1^T whole, 1 copy
                pl.BlockSpec(memory_space=pltpu.MemorySpace.VMEM),    # b1 row
                pl.BlockSpec(memory_space=pltpu.MemorySpace.VMEM),    # w2 row
                pl.BlockSpec(memory_space=pltpu.MemorySpace.SMEM),    # b2 scalar
            ],
            out_specs=pl.BlockSpec((tb, 1), lambda i: (i, 0)),        # natural layout
            compiler_params=pltpu.CompilerParams(
                dimension_semantics=("parallel",),
                vmem_limit_bytes=int(vmem_limit),
            ),
            cost_estimate=cost,
        )(x_p, w1t, b1_row, w2_row, b2_smem)
    else:
        out = pl.pallas_call(
            _value_head_kernel_ktiled,
            out_shape=jax.ShapeDtypeStruct((b_pad, 1), jnp.float32),
            grid=(nb, nk),
            in_specs=[
                pl.BlockSpec((tb, tk), lambda i, k: (i, k)),          # x slab
                pl.BlockSpec((tk, h_pad), lambda i, k: (k, 0)),       # w1^T slab (pipelined)
                pl.BlockSpec(memory_space=pltpu.MemorySpace.VMEM),    # b1 row
                pl.BlockSpec(memory_space=pltpu.MemorySpace.VMEM),    # w2 row
                pl.BlockSpec(memory_space=pltpu.MemorySpace.SMEM),    # b2 scalar
            ],
            out_specs=pl.BlockSpec((tb, 1), lambda i, k: (i, 0)),
            scratch_shapes=[pltpu.VMEM((tb, h_pad), jnp.float32)],
            compiler_params=pltpu.CompilerParams(
                dimension_semantics=("parallel", "arbitrary"),
                vmem_limit_bytes=int(vmem_limit),
            ),
            cost_estimate=cost,
        )(x_p, w1t, b1_row, w2_row, b2_smem)

    return out[:B]


# ---------------------------------------------------------------------------
# References
# ---------------------------------------------------------------------------
def reference_bf16(x, w1, b1, w2, b2):
    # Same math as the kernel (bf16 MXU inputs, f32 accumulate).
    h = jnp.dot(x.astype(jnp.bfloat16), w1.T.astype(jnp.bfloat16),
                preferred_element_type=jnp.float32) + b1
    h = jnp.maximum(h, 0.0)
    return jnp.sum(h * w2, axis=-1, keepdims=True) + b2


def reference_f32(x, w1, b1, w2, b2):
    # Original full-f32 PyTorch semantics.
    h = jnp.maximum(x @ w1.T + b1, 0.0)
    return h @ w2.T + b2


if __name__ == "__main__":
    key = jax.random.PRNGKey(0)
    kx, k1, kb1, k2, kb2, kx2, kx3, k3 = jax.random.split(key, 8)

    # --- test 1: tiny (module demo) shapes ---------------------------------
    batch, feature_dim, hidden_dim = 2, 16, 32
    x = jax.random.normal(kx, (batch, feature_dim), dtype=jnp.float32)
    w1 = jax.random.normal(k1, (hidden_dim, feature_dim), dtype=jnp.float32) * 0.1
    b1 = jax.random.normal(kb1, (hidden_dim,), dtype=jnp.float32) * 0.1
    w2 = jax.random.normal(k2, (1, hidden_dim), dtype=jnp.float32) * 0.1
    b2 = jax.random.normal(kb2, (1,), dtype=jnp.float32) * 0.1

    out = jax.block_until_ready(res_value_head(x, w1, b1, w2, b2))
    assert out.shape == (batch, 1), out.shape
    assert jnp.allclose(out, reference_bf16(x, w1, b1, w2, b2),
                        atol=2e-3, rtol=2e-3)
    assert jnp.allclose(out, reference_f32(x, w1, b1, w2, b2),
                        atol=5e-2, rtol=5e-2)

    # --- test 2: batch large enough to split the grid (>=2 tiles) ----------
    batch2 = 300
    x2 = jax.random.normal(kx2, (batch2, feature_dim), dtype=jnp.float32)
    out2 = jax.block_until_ready(res_value_head(x2, w1, b1, w2, b2))
    assert out2.shape == (batch2, 1), out2.shape
    assert jnp.allclose(out2, reference_bf16(x2, w1, b1, w2, b2),
                        atol=2e-3, rtol=2e-3)
    assert jnp.allclose(out2, reference_f32(x2, w1, b1, w2, b2),
                        atol=5e-2, rtol=5e-2)

    # --- test 3: exercise the K-tiled (streamed-weight) path ---------------
    batch3, feat3, hid3 = 16, 1536, 64
    x3 = jax.random.normal(kx3, (batch3, feat3), dtype=jnp.float32)
    w1b = jax.random.normal(k3, (hid3, feat3), dtype=jnp.float32) * 0.05
    b1b = jax.random.normal(kb1, (hid3,), dtype=jnp.float32) * 0.1
    w2b = jax.random.normal(k2, (1, hid3), dtype=jnp.float32) * 0.1
    out3 = jax.block_until_ready(
        res_value_head(x3, w1b, b1b, w2b, b2, force_ktile=True))
    assert out3.shape == (batch3, 1), out3.shape
    assert jnp.allclose(out3, reference_bf16(x3, w1b, b1b, w2b, b2),
                        atol=5e-3, rtol=5e-3)

    print("KERNEL_OK")
</pallas_src>

<mosaic_0001>
module attributes {stable_mosaic.version = 11 : i64} {
  func.func @_value_head_kernel_single(%arg0: i32, %arg1: memref<8x16xf32, #tpu.memory_space<vmem>>, %arg2: memref<16x128xbf16, #tpu.memory_space<vmem>>, %arg3: memref<1x128xf32, #tpu.memory_space<vmem>>, %arg4: memref<1x128xf32, #tpu.memory_space<vmem>>, %arg5: memref<1x1xf32, #tpu.memory_space<smem>>, %arg6: memref<8x1xf32, #tpu.memory_space<vmem>>) attributes {dimension_semantics = [#tpu.dimension_semantics<parallel>], iteration_bounds = array<i64: 1>, scalar_prefetch = 0 : i64, scratch_operands = 0 : i64, tpu.core_type = #tpu.core_type<tc>, window_params = [{transform_indices = @transform_0, window_bounds = array<i64: 8, 16>}, {pipeline_mode = #tpu.pipeline_mode<synchronous>, transform_indices = @transform_1, window_bounds = array<i64: 16, 128>}, {pipeline_mode = #tpu.pipeline_mode<synchronous>, transform_indices = @transform_2, window_bounds = array<i64: 1, 128>}, {pipeline_mode = #tpu.pipeline_mode<synchronous>, transform_indices = @transform_3, window_bounds = array<i64: 1, 128>}, {transform_indices = @transform_4, window_bounds = array<i64: 1, 1>}, {transform_indices = @transform_5, window_bounds = array<i64: 8, 1>}]} {
    %c0 = arith.constant 0 : index
    %c0_0 = arith.constant 0 : index
    %0 = vector.load %arg1[%c0, %c0_0] : memref<8x16xf32, #tpu.memory_space<vmem>>, vector<8x16xf32>
    %1 = arith.truncf %0 : vector<8x16xf32> to vector<8x16xbf16>
    %c0_1 = arith.constant 0 : index
    %c0_2 = arith.constant 0 : index
    %2 = vector.load %arg2[%c0_1, %c0_2] : memref<16x128xbf16, #tpu.memory_space<vmem>>, vector<16x128xbf16>
    %cst = arith.constant dense<0.000000e+00> : vector<8x128xf32>
    %3 = tpu.matmul %1, %2, %cst {dimension_numbers = #tpu.dot_dimension_numbers<[1], [0], [0], [1], [0, 0, 1, 1], [], []>} : vector<8x16xbf16>, vector<16x128xbf16>, vector<8x128xf32> -> vector<8x128xf32>
    %c0_3 = arith.constant 0 : index
    %c0_4 = arith.constant 0 : index
    %4 = vector.load %arg3[%c0_3, %c0_4] : memref<1x128xf32, #tpu.memory_space<vmem>>, vector<1x128xf32>
    %5 = vector.broadcast %4 : vector<1x128xf32> to vector<8x128xf32>
    %6 = arith.addf %3, %5 : vector<8x128xf32>
    %cst_5 = arith.constant 0.000000e+00 : f32
    %7 = vector.broadcast %cst_5 : f32 to vector<8x128xf32>
    %8 = arith.maximumf %6, %7 : vector<8x128xf32>
    %c0_6 = arith.constant 0 : index
    %c0_7 = arith.constant 0 : index
    %9 = vector.load %arg4[%c0_6, %c0_7] : memref<1x128xf32, #tpu.memory_space<vmem>>, vector<1x128xf32>
    %10 = vector.broadcast %9 : vector<1x128xf32> to vector<8x128xf32>
    %11 = arith.mulf %8, %10 : vector<8x128xf32>
    %cst_8 = arith.constant dense<0.000000e+00> : vector<8xf32>
    %12 = vector.multi_reduction <add>, %11, %cst_8 [1] : vector<8x128xf32> to vector<8xf32>
    %13 = vector.shape_cast %12 : vector<8xf32> to vector<8x1xf32>
    %c0_9 = arith.constant 0 : index
    %c0_10 = arith.constant 0 : index
    %14 = memref.load %arg5[%c0_9, %c0_10] : memref<1x1xf32, #tpu.memory_space<smem>>
    %15 = vector.broadcast %14 : f32 to vector<8x1xf32>
    %16 = arith.addf %13, %15 : vector<8x1xf32>
    %c0_11 = arith.constant 0 : index
    %c0_12 = arith.constant 0 : index
    %17 = vector.load %arg6[%c0_11, %c0_12] : memref<8x1xf32, #tpu.memory_space<vmem>>, vector<8x1xf32>
    tpu.vector_store %arg6[%c0_11, %c0_12], %16 {strides = array<i32>} : memref<8x1xf32, #tpu.memory_space<vmem>>, vector<8x1xf32>,
    return
  }
  func.func @transform_0(%arg0: i32) -> (i32, i32) {
    %c0_i32 = arith.constant 0 : i32
    %c0_i32_0 = arith.constant 0 : i32
    return %arg0, %c0_i32 : i32, i32
  }
  func.func @transform_1(%arg0: i32) -> (i32, i32) {
    %c0_i32 = arith.constant 0 : i32
    %c0_i32_0 = arith.constant 0 : i32
    %c0_i32_1 = arith.constant 0 : i32
    return %c0_i32, %c0_i32_0 : i32, i32
  }
  func.func @transform_2(%arg0: i32) -> (i32, i32) {
    %c0_i32 = arith.constant 0 : i32
    %c0_i32_0 = arith.constant 0 : i32
    %c0_i32_1 = arith.constant 0 : i32
    return %c0_i32, %c0_i32_0 : i32, i32
  }
  func.func @transform_3(%arg0: i32) -> (i32, i32) {
    %c0_i32 = arith.constant 0 : i32
    %c0_i32_0 = arith.constant 0 : i32
    %c0_i32_1 = arith.constant 0 : i32
    return %c0_i32, %c0_i32_0 : i32, i32
  }
  func.func @transform_4(%arg0: i32) -> (i32, i32) {
    %c0_i32 = arith.constant 0 : i32
    %c0_i32_0 = arith.constant 0 : i32
    %c0_i32_1 = arith.constant 0 : i32
    return %c0_i32, %c0_i32_0 : i32, i32
  }
  func.func @transform_5(%arg0: i32) -> (i32, i32) {
    %c0_i32 = arith.constant 0 : i32
    %c0_i32_0 = arith.constant 0 : i32
    return %arg0, %c0_i32 : i32, i32
  }
}

</mosaic_0001>

<bundles_post_ra>
// kernel: res_value_head.1
= control target key start
LH: loop header
LB: loop body
LE: loop exit
PB: predicated region body
PF: predicated region fallthrough
CT: control target
= control target key end

     0   :  { %vm36_vm0 = vcmask 130048   ;;  %vm64_vm1 = vcmask 7168   ;;  %s126_s1 = inlined_call_operand.vmem [shape: bf16[16,128], index: 1, kind: input, shape index: {}]   ;;  %s127_s0 = inlined_call_operand.vmem [shape: f32[8,16], index: 0, kind: input, shape index: {}]   ;;  %s128_s2 = inlined_call_operand.vmem [shape: f32[1,128], index: 2, kind: input, shape index: {}]   ;;  %s129_s3 = inlined_call_operand.vmem [shape: f32[1,128], index: 3, kind: input, shape index: {}]   ;;  %s130_s4 = inlined_call_operand.<no memory space> [shape: f32[1,1], index: 4, kind: input, shape index: {}]   ;;  %s131_s5 = inlined_call_operand.vmem [shape: f32[8,1], index: 5, kind: output, shape index: {}]  }
   0x1   :  { %v75_v0 = vld [vmem:[%s126_s1] sm:$0xff]  ;;  %v62_v10 = vstv %s130_s4 }
   0x2   :  { %v22_v1 = vld [vmem:[%s127_s0] sm:$0xff]  ;;  %47 = vmatpush.bf16.msra.mxu0 %v75_v0 }
   0x3   :  { %v23_v2 = vpack.c.bf16 %v22_v1, %v22_v1  ;;  %v76_v3 = vld [vmem:[%s128_s2] ss:$0 sm:$0xff] }
   0x4   :  { %v77_v6 = vld [vmem:[%s129_s3] ss:$0 sm:$0xff] }
   0x5   :  { %74 = vmatmul.msk.bf16.vlgmr.msra.gmra.mxu0 %vm36_vm0, %v23_v2 }
  0x82   :  { %v49_v4 = vpop.f32.mrf.mxu0 }
  0x83   :  { %v50_v5 = vadd.f32 %v76_v3, %v49_v4 }
  0x85   :  { %v53_v7 = vmax.f32 %v50_v5, 0.0 }
  0x87   :  { %v58_v8 = vmul.f32 %v77_v6, %v53_v7 }
  0x89   :  { %59 = vadd.xlane.f32.xlu0 %v58_v8 }
  0x8a   :  { %v51_v9 = vpop.f32.mrf.mxu0 }
  0xfc   :  { %v60_v11 = vpop.xlane.xlu0 %59 }
  0xfd   :  { %v63_v12 = vadd.f32 %v62_v10, %v60_v11 }
  0xff   :  { %65 = vst.msk [vmem:[%s131_s5] sm:$0xff] %vm64_vm1, %v63_v12 }

</bundles_post_ra>
